<compile_context>
chip_gen: v7x
topology: tpu7x:2x2x1
jax: 0.10.0
libtpu: 0.0.40
codegen_flags: <defaults>
</compile_context>

<pallas_src>
import functools

import jax
import jax.numpy as jnp
from jax import lax
from jax.experimental import pallas as pl
from jax.experimental.pallas import tpu as pltpu


def _round_up(x, m):
    return (x + m - 1) // m * m


def _bow_kernel(idx_ref, emb_ref, bias_ref, out_ref, acc_ref, *,
                tile_w, seq_chunk, n_seq_chunks):
    # idx_ref : (padded_seq, 1) int32   -- whole (padded) index vector, resident
    # emb_ref : (tile_w, ntags) float32 -- current vocab tile of the table
    # bias_ref: (1, ntags) float32
    # out_ref : (1, ntags) float32
    # acc_ref : (1, ntags) float32 VMEM scratch (persists across grid steps)
    w = pl.program_id(0)

    @pl.when(w == 0)
    def _():
        acc_ref[...] = jnp.zeros_like(acc_ref)

    # Column ids covered by this vocab tile (hoisted out of the seq loop).
    col_ids = w * tile_w + lax.broadcasted_iota(
        jnp.int32, (seq_chunk, tile_w), 1)

    def body(c, counts):
        start = pl.multiple_of(c * seq_chunk, seq_chunk)
        idx_chunk = idx_ref[pl.ds(start, seq_chunk), :]          # (chunk, 1)
        onehot = (idx_chunk == col_ids).astype(jnp.float32)      # (chunk, tile_w)
        return counts + jnp.sum(onehot, axis=0, keepdims=True)   # (1, tile_w)

    counts = lax.fori_loop(
        0, n_seq_chunks, body,
        jnp.zeros((1, tile_w), jnp.float32),
        unroll=n_seq_chunks <= 8,
    )

    # counts @ emb_tile : (1, tile_w) x (tile_w, ntags) -> (1, ntags).
    acc_ref[...] += jnp.dot(counts, emb_ref[...],
                            preferred_element_type=jnp.float32)

    @pl.when(w == pl.num_programs(0) - 1)
    def _():
        out_ref[...] = acc_ref[...] + bias_ref[...]


def bow_forward(indices, emb_table, bias, *, tile_w=2048, seq_chunk=256):
    """indices: int [seq_len]; emb_table: f32 [nwords, ntags]; bias: f32 [ntags].

    Returns f32 [1, ntags], matching the PyTorch module's `out.view(1, -1)`.
    """
    seq_len = int(indices.shape[0])
    nwords, ntags = emb_table.shape

    # --- vocab tiling (reduction grid axis) ----------------------------------
    tile_w = int(min(tile_w, _round_up(nwords, 8)))     # multiple of 8 sublanes
    padded_w = _round_up(nwords, tile_w)
    n_w_tiles = padded_w // tile_w
    emb = emb_table.astype(jnp.float32)
    if padded_w != nwords:
        emb = jnp.pad(emb, ((0, padded_w - nwords), (0, 0)))

    # --- seq chunking (bounds vreg pressure of the one-hot compare) ----------
    seq_chunk = int(min(seq_chunk, _round_up(seq_len, 8)))
    padded_seq = _round_up(seq_len, seq_chunk)
    n_seq_chunks = padded_seq // seq_chunk

    idx = indices.astype(jnp.int32)
    if padded_seq != seq_len:
        # -1 never matches any (non-negative) word id -> padded rows add zero.
        idx = jnp.pad(idx, (0, padded_seq - seq_len), constant_values=-1)
    idx2d = idx.reshape(padded_seq, 1)
    bias2d = bias.astype(jnp.float32).reshape(1, ntags)

    kernel = functools.partial(
        _bow_kernel, tile_w=tile_w, seq_chunk=seq_chunk,
        n_seq_chunks=n_seq_chunks)

    return pl.pallas_call(
        kernel,
        out_shape=jax.ShapeDtypeStruct((1, ntags), jnp.float32),
        grid_spec=pltpu.PrefetchScalarGridSpec(
            num_scalar_prefetch=0,
            grid=(n_w_tiles,),
            in_specs=[
                pl.BlockSpec((padded_seq, 1), lambda w: (0, 0)),   # indices (resident)
                pl.BlockSpec((tile_w, ntags), lambda w: (w, 0)),   # streamed table tile
                pl.BlockSpec((1, ntags), lambda w: (0, 0)),        # bias (resident)
            ],
            out_specs=pl.BlockSpec((1, ntags), lambda w: (0, 0)),
            scratch_shapes=[pltpu.VMEM((1, ntags), jnp.float32)],
        ),
        compiler_params=pltpu.CompilerParams(
            dimension_semantics=("arbitrary",),       # vocab axis is a reduction
            vmem_limit_bytes=32 * 1024 * 1024,        # safe on v7x's 64 MiB VMEM
        ),
    )(idx2d, emb, bias2d)


if __name__ == "__main__":
    nwords, ntags, seq_len = 32, 8, 8

    key = jax.random.PRNGKey(0)
    k_emb, k_idx = jax.random.split(key)

    # Xavier-uniform init, same as nn.init.xavier_uniform_ on (nwords, ntags).
    bound = (6.0 / (nwords + ntags)) ** 0.5
    emb_table = jax.random.uniform(
        k_emb, (nwords, ntags), dtype=jnp.float32, minval=-bound, maxval=bound
    )
    bias = jnp.zeros((ntags,), dtype=jnp.float32)  # torch.zeros(ntags)

    indices = jax.random.randint(k_idx, (seq_len,), 0, nwords, dtype=jnp.int32)

    out = bow_forward(indices, emb_table, bias)
    out = jax.block_until_ready(out)

    # Pure-JAX reference check.
    ref = jnp.sum(emb_table[indices], axis=0).reshape(1, -1) + bias.reshape(1, -1)
    assert out.shape == (1, ntags)
    assert jnp.allclose(out, ref, atol=1e-5, rtol=1e-5)

    print("KERNEL_OK")
</pallas_src>

<mosaic_0001>
module attributes {stable_mosaic.version = 11 : i64} {
  func.func @_bow_kernel(%arg0: i32, %arg1: memref<8x1xi32, #tpu.memory_space<vmem>>, %arg2: memref<32x8xf32, #tpu.memory_space<vmem>>, %arg3: memref<1x8xf32, #tpu.memory_space<vmem>>, %arg4: memref<1x8xf32, #tpu.memory_space<vmem>>, %arg5: memref<1x8xf32, #tpu.memory_space<vmem>>) attributes {dimension_semantics = [#tpu.dimension_semantics<arbitrary>], iteration_bounds = array<i64: 1>, scalar_prefetch = 0 : i64, scratch_operands = 1 : i64, tpu.core_type = #tpu.core_type<tc>, window_params = [{pipeline_mode = #tpu.pipeline_mode<synchronous>, transform_indices = @transform_0, window_bounds = array<i64: 8, 1>}, {transform_indices = @transform_1, window_bounds = array<i64: 32, 8>}, {pipeline_mode = #tpu.pipeline_mode<synchronous>, transform_indices = @transform_2, window_bounds = array<i64: 1, 8>}, {pipeline_mode = #tpu.pipeline_mode<synchronous>, transform_indices = @transform_3, window_bounds = array<i64: 1, 8>}]} {
    %c0_i32 = arith.constant 0 : i32
    %0 = arith.cmpi eq, %arg0, %c0_i32 : i32
    %1 = arith.extui %0 : i1 to i32
    %c0_i32_0 = arith.constant 0 : i32
    %2 = arith.cmpi ne, %1, %c0_i32_0 : i32
    scf.if %2 {
      %cst_12 = arith.constant 0.000000e+00 : f32
      %27 = vector.broadcast %cst_12 : f32 to vector<1x8xf32>
      %c0_13 = arith.constant 0 : index
      %c0_14 = arith.constant 0 : index
      %28 = vector.load %arg5[%c0_13, %c0_14] : memref<1x8xf32, #tpu.memory_space<vmem>>, vector<1x8xf32>
      tpu.vector_store %arg5[%c0_13, %c0_14], %27 {strides = array<i32>} : memref<1x8xf32, #tpu.memory_space<vmem>>, vector<1x8xf32>,
    } else {
    }
    %c32_i32 = arith.constant 32 : i32
    %3 = arith.muli %arg0, %c32_i32 : i32
    %4 = tpu.iota {dimensions = array<i32: 1>} : vector<8x32xi32>
    %5 = vector.broadcast %3 : i32 to vector<8x32xi32>
    %6 = arith.addi %5, %4 : vector<8x32xi32>
    %cst = arith.constant 0.000000e+00 : f32
    %7 = vector.broadcast %cst : f32 to vector<1x32xf32>
    %c0_i32_1 = arith.constant 0 : i32
    %c8_i32 = arith.constant 8 : i32
    %8 = arith.muli %c0_i32_1, %c8_i32 : i32
    %9 = tpu.assume_multiple %8, 8 : i32
    %10 = arith.index_cast %9 : i32 to index
    %c0 = arith.constant 0 : index
    %11 = vector.load %arg1[%10, %c0] : memref<8x1xi32, #tpu.memory_space<vmem>>, vector<8x1xi32>
    %12 = vector.broadcast %11 : vector<8x1xi32> to vector<8x32xi32>
    %13 = arith.cmpi eq, %12, %6 : vector<8x32xi32>
    %14 = arith.extui %13 : vector<8x32xi1> to vector<8x32xi32>
    %15 = arith.sitofp %14 : vector<8x32xi32> to vector<8x32xf32>
    %cst_2 = arith.constant dense<0.000000e+00> : vector<32xf32>
    %16 = vector.multi_reduction <add>, %15, %cst_2 [0] : vector<8x32xf32> to vector<32xf32>
    %17 = vector.shape_cast %16 : vector<32xf32> to vector<1x32xf32>
    %18 = arith.addf %7, %17 : vector<1x32xf32>
    %c1_i32 = arith.constant 1 : i32
    %c0_3 = arith.constant 0 : index
    %c0_4 = arith.constant 0 : index
    %19 = vector.load %arg5[%c0_3, %c0_4] : memref<1x8xf32, #tpu.memory_space<vmem>>, vector<1x8xf32>
    %c0_5 = arith.constant 0 : index
    %c0_6 = arith.constant 0 : index
    %20 = vector.load %arg2[%c0_5, %c0_6] : memref<32x8xf32, #tpu.memory_space<vmem>>, vector<32x8xf32>
    %cst_7 = arith.constant dense<0.000000e+00> : vector<1x8xf32>
    %21 = tpu.matmul %18, %20, %cst_7 {dimension_numbers = #tpu.dot_dimension_numbers<[1], [0], [0], [1], [0, 0, 1, 1], [], []>} : vector<1x32xf32>, vector<32x8xf32>, vector<1x8xf32> -> vector<1x8xf32>
    %22 = arith.addf %19, %21 : vector<1x8xf32>
    %c0_8 = arith.constant 0 : index
    %c0_9 = arith.constant 0 : index
    %23 = vector.load %arg5[%c0_8, %c0_9] : memref<1x8xf32, #tpu.memory_space<vmem>>, vector<1x8xf32>
    tpu.vector_store %arg5[%c0_8, %c0_9], %22 {strides = array<i32>} : memref<1x8xf32, #tpu.memory_space<vmem>>, vector<1x8xf32>,
    %c0_i32_10 = arith.constant 0 : i32
    %24 = arith.cmpi eq, %arg0, %c0_i32_10 : i32
    %25 = arith.extui %24 : i1 to i32
    %c0_i32_11 = arith.constant 0 : i32
    %26 = arith.cmpi ne, %25, %c0_i32_11 : i32
    scf.if %26 {
      %c0_12 = arith.constant 0 : index
      %c0_13 = arith.constant 0 : index
      %27 = vector.load %arg5[%c0_12, %c0_13] : memref<1x8xf32, #tpu.memory_space<vmem>>, vector<1x8xf32>
      %c0_14 = arith.constant 0 : index
      %c0_15 = arith.constant 0 : index
      %28 = vector.load %arg3[%c0_14, %c0_15] : memref<1x8xf32, #tpu.memory_space<vmem>>, vector<1x8xf32>
      %29 = arith.addf %27, %28 : vector<1x8xf32>
      %c0_16 = arith.constant 0 : index
      %c0_17 = arith.constant 0 : index
      %30 = vector.load %arg4[%c0_16, %c0_17] : memref<1x8xf32, #tpu.memory_space<vmem>>, vector<1x8xf32>
      tpu.vector_store %arg4[%c0_16, %c0_17], %29 {strides = array<i32>} : memref<1x8xf32, #tpu.memory_space<vmem>>, vector<1x8xf32>,
    } else {
    }
    return
  }
  func.func @transform_0(%arg0: i32) -> (i32, i32) {
    %c0_i32 = arith.constant 0 : i32
    %c0_i32_0 = arith.constant 0 : i32
    %c0_i32_1 = arith.constant 0 : i32
    return %c0_i32, %c0_i32_0 : i32, i32
  }
  func.func @transform_1(%arg0: i32) -> (i32, i32) {
    %c0_i32 = arith.constant 0 : i32
    %c0_i32_0 = arith.constant 0 : i32
    return %arg0, %c0_i32 : i32, i32
  }
  func.func @transform_2(%arg0: i32) -> (i32, i32) {
    %c0_i32 = arith.constant 0 : i32
    %c0_i32_0 = arith.constant 0 : i32
    %c0_i32_1 = arith.constant 0 : i32
    return %c0_i32, %c0_i32_0 : i32, i32
  }
  func.func @transform_3(%arg0: i32) -> (i32, i32) {
    %c0_i32 = arith.constant 0 : i32
    %c0_i32_0 = arith.constant 0 : i32
    %c0_i32_1 = arith.constant 0 : i32
    return %c0_i32, %c0_i32_0 : i32, i32
  }
}

</mosaic_0001>

<bundles_post_ra>
// kernel: tpu_custom_call.1
= control target key start
LH: loop header
LB: loop body
LE: loop exit
PB: predicated region body
PF: predicated region fallthrough
CT: control target
= control target key end

     0   :  { %s256_s0 = inlined_call_operand.vmem [shape: s32[8,1], index: 0, kind: input, shape index: {}]   ;;  %s257_s1 = inlined_call_operand.vmem [shape: f32[32,8], index: 1, kind: input, shape index: {}]   ;;  %s258_s2 = inlined_call_operand.vmem [shape: f32[1,8], index: 2, kind: input, shape index: {}]   ;;  %s259_s3 = inlined_call_operand.hbm [shape: f32[1,8], index: 3, kind: output, shape index: {}]  }
   0x1   :  { %v26_v0 = vld [vmem:[%s256_s0] sm:$0xff] }
   0x2   :  { %8 = vsyncpa [#allocation4], 0  ;;  %v198_v1 = vmov 0   ;;  %v43_v2 = vld [vmem:[%s257_s1] sm:$0xff]  ;;  %v44_v3 = vld [vmem:[%s257_s1 + $0x8] sm:$0xff]  ;;  %v199_v5 = vmov 0.0|0.0   ;;  %v22_v10 = vlaneseq }
   0x3   :  { %173 = vset.pattern.permute.xlu0 %v198_v1  ;;  %v163_v4 = vpack.c.bf16 %v44_v3, %v43_v2  ;;  %162 = vmatprep.subr.bf16.mxu0 %v199_v5  ;;  %v45_v6 = vld [vmem:[%s257_s1 + $0x10] sm:$0xff]  ;;  %v46_v7 = vld [vmem:[%s257_s1 + $0x18] sm:$0xff]  ;;  %vm200_vm0 = vmmov 0   ;;  %v201_v9 = vmov 0.0   ;;  %vm19_vm1 = vcmask 57344   ;;  %s202_s22 = smov [#allocation3]  }
   0x4   :  { %28 = vperm.xlu0 %173, %v26_v0   ;;  %v166_v8 = vpack.c.bf16 %v46_v7, %v45_v6  ;;  %159 = vmatprep.mubr.msk.f32.mxu0 %vm200_vm0, %v201_v9  ;;  %20 = vst.msk [vmem:[#allocation2] sm:$0x1] %vm19_vm1, %v201_v9  ;;  %v23_v11 = vand.u32 127, %v22_v10  ;;  %vm33_vm2 = vcmask 261120   ;;  %v127_v25 = vld [vmem:[%s258_s2] sm:$0x1] }
   0x5   :  { %164 = vmatpush3.bf16.msra.mxu0 %v163_v4  ;;  %s136_s23 = sshll.u32 %s202_s22, 4  ;;  %s137_s23 = int_to_ptr.vmem [resolvable:$true] %s136_s23 }
   0x6   :  { %165 = vmatprep.subr.bf16.mxu0 %v199_v5  ;;  %s174_s24 = scalar_lea.vmem %s137_s23, 16  ;;  %s178_s25 = scalar_lea.vmem %s137_s23, 32 }
   0x7   :  { %p175_p0 = scmp.ne.s32.totalorder %s137_s23, %s174_s24  ;;  %p179_p1 = scmp.lt.s32.totalorder %s137_s23, %s137_s23 }
   0x8   :  { %p180_p2 = scmp.lt.s32.totalorder %s178_s25, %s174_s24 }
   0x9   :  { %167 = vmatpush3.bf16.msra.mxu0 %v166_v8 }
   0xa   :  { %p181_p3 = por %p180_p2, %p179_p1 }
   0xb   :  { %v42_v21 = vld [vmem:[#allocation2] sm:$0x1] }
   0xc   :  { %p182_p4 = pnand %p181_p3, %p175_p0 }
  0x83   :  { %v29_v12 = vpop.permute.xlu0 %28 }
  0x84   :  { %vm30_vm3 = vcmp.eq.s32.totalorder %v29_v12, %v23_v11 }
  0x85   :  { %v144_v13 = vsel %vm30_vm3, 1.0, %v201_v9 }
  0x86   :  { %v34_v14 = vsel %vm33_vm2, %v144_v13, 0.0 }
  0x87   :  { %v35_v15 = vrot.slane %v34_v14, 4 }
  0x89   :  { %v36_v16 = vadd.f32 %v35_v15, %v34_v14 }
  0x8b   :  { %v37_v17 = vrot.slane %v36_v16, 2 }
  0x8d   :  { %v38_v18 = vadd.f32 %v37_v17, %v36_v16 }
  0x8f   :  { %v39_v19 = vrot.slane %v38_v18, 1 }
  0x91   :  { %v40_v20 = vadd.f32 %v39_v19, %v38_v18 }
  0x93   :  { %160 = vmatmul.mubr.msk.f32.vlgmr.msra.gmra.mrb[0].mxu0 %vm33_vm2, %v40_v20 }
 0x166   :  { %v116_v22 = vpop.f32.mrb[0].mxu0 }
 0x167   :  { %v120_v23 = vadd.f32 %v116_v22, %v42_v21  ;;  %v161_v24 = vpop.f32.mrb[1].mxu0 }
 0x169   :  { %122 = vst.msk [vmem:[#allocation2] sm:$0x1] %vm19_vm1, %v120_v23 }
 0x170   :  { %v126_v26 = vld [vmem:[#allocation2] sm:$0x1] }
 0x171   :  { %v128_v27 = vadd.f32 %v127_v25, %v126_v26 }
 0x173   :  { %129 = vst.msk [vmem:[#allocation3] sm:$0x1] %vm19_vm1, %v128_v27 }
 0x174   :  { %185 = shalt.err (!%p182_p4)
}
 0x175   :  { %s186_s28 = scalar_lea.hbm %s259_s3, 16 }
 0x176   :  { %p187_p5 = scmp.ne.s32.totalorder %s259_s3, %s186_s28  ;;  %p190_p6 = scmp.lt.u32.totalorder %s186_s28, %s259_s3 }
 0x178   :  { %p192_p7 = pnand %p190_p6, %p187_p5 }
 0x17a   :  { %195 = shalt.err (!%p192_p7)
}
 0x17b   :  { %139 = dma.vmem_to_hbm [thread:$0]  %s137_s23, 16, %s259_s3, [#allocation4]  }
 0x17c   :  { %196 = dma.done.wait [#allocation4], 16  }
 0x17d   :  { %197 = vsyncadd [#allocation4], 4294967280 }
 0x17e   :  { %143 = vsyncpa [#allocation4], 1 }

</bundles_post_ra>
